<compile_context>
chip_gen: v6e
topology: v6e:2x2x1
jax: 0.10.0
libtpu: 0.0.40
codegen_flags: <defaults>
</compile_context>

<pallas_src>
import functools

import jax
import jax.numpy as jnp
from jax.experimental import pallas as pl
from jax.experimental.pallas import tpu as pltpu


def _round_up(x, m):
    return ((x + m - 1) // m) * m


def _mlstm_seq_kernel(x_ref, h0_ref, c0_ref, w_ref, b_ref,
                      h_out_ref, c_out_ref,
                      h_st, c_st, carry,
                      *, hidden_size, h_row_offset):
    # Grid axis 0 = time step t (serial recurrence, "arbitrary").
    # x_ref:     (B, R)         f32   external input at step t, zero-padded to R cols
    # h0_ref:    (L, B, Hp)     f32   initial hidden (resident; read only at t==0)
    # c0_ref:    (L, B, Hp)     f32   initial cell   (resident; read only at t==0)
    # w_ref:     (L, Kp, 4*Hp)  bf16/f32  fused [W_ih^T ; W_hh^T], resident
    # b_ref:     (L, 1, 4*Hp)   f32   b_ih + b_hh, resident
    # h_out_ref: (L, B, Hp)     f32   per-step output slab (t-indexed out block)
    # c_out_ref: (L, B, Hp)     f32
    # h_st/c_st: VMEM (L, B, Hp) f32  state carried across grid steps
    # carry:     VMEM (B, Kp)   weight dtype; cols [0:R) = layer input, [R:R+H) = h_prev
    num_layers, _, hp = h_st.shape
    H = hidden_size
    R = h_row_offset
    wd = carry.dtype
    t = pl.program_id(0)

    @pl.when(t == 0)
    def _init():
        # Zero once: dead K columns [R+H:Kp) are never written again and must be
        # finite (they only ever hit zero weight rows).  Load the initial state.
        carry[...] = jnp.zeros_like(carry)
        h_st[...] = h0_ref[...]
        c_st[...] = c0_ref[...]

    # External input for this step -> input block of the fused K carry.  x arrives
    # zero-padded to R = max(D, H) columns, which also clears any stale h_new left by
    # the previous step's last layer.
    carry[:, 0:R] = x_ref[...].astype(wd)

    for layer in range(num_layers):          # static unroll; L known at trace time
        carry[:, R:R + H] = h_st[layer, :, 0:H].astype(wd)
        c_prev = c_st[layer]

        # One fused MXU matmul per layer (input + hidden contributions together),
        # K = Kp, f32 accumulation.  Gate elementwise math stays f32.
        gates = jnp.dot(carry[...], w_ref[layer],
                        preferred_element_type=jnp.float32) + b_ref[layer]

        # PyTorch nn.LSTMCell gate order: input, forget, cell(g), output.  Each gate
        # occupies a 128-aligned Hp-wide lane block -> free slices.
        i_g = jax.nn.sigmoid(gates[:, 0 * hp:1 * hp])
        f_g = jax.nn.sigmoid(gates[:, 1 * hp:2 * hp])
        g_g = jnp.tanh(gates[:, 2 * hp:3 * hp])
        o_g = jax.nn.sigmoid(gates[:, 3 * hp:4 * hp])

        c_new = f_g * c_prev + i_g * g_g
        h_new = o_g * jnp.tanh(c_new)

        h_st[layer] = h_new
        c_st[layer] = c_new
        h_out_ref[layer] = h_new
        c_out_ref[layer] = c_new

        if layer + 1 < num_layers:
            # Feed this layer's hidden to the next layer's input rows [0:H).  Stale
            # columns [H:R) (when D > H) hit zero W_ih rows of the next layer.
            carry[:, 0:H] = h_new[:, 0:H].astype(wd)


def pack_mlstm_params(w_ih_list, w_hh_list, b_ih_list, b_hh_list,
                      param_dtype=jnp.bfloat16):
    """Pack PyTorch-layout LSTMCell parameters ONCE, outside the per-step hot path.

    w_ih_list[l]: (4H, in_l) with in_0 = input_size, else hidden_size
    w_hh_list[l]: (4H, H);  b_*_list[l]: (4H,)
    Returns:
      w_packed: (L, Kp, 4*Hp) fused [W_ih^T ; W_hh^T]; W_ih^T rows at [0:in_l],
                W_hh^T rows at [R:R+H] with R = max(input_size, H);
                Kp = round_up(R + H, 128); each gate padded to Hp = round_up(H, 128).
      b_packed: (L, 1, 4*Hp)  b_ih + b_hh (kept f32), gate padded.
    """
    f32 = jnp.float32
    num_layers = len(w_ih_list)
    four_h, input_size = w_ih_list[0].shape
    H = four_h // 4
    Hp = _round_up(H, 128)                   # per-gate lane-aligned width
    R = max(input_size, H)                   # recurrent-h row offset in the fused K
    Kp = _round_up(R + H, 128)               # fused contraction depth (128 here)

    w = jnp.zeros((num_layers, Kp, 4 * Hp), f32)
    b = jnp.zeros((num_layers, 1, 4 * Hp), f32)
    for l in range(num_layers):
        wih_t = jnp.asarray(w_ih_list[l], f32).T          # (in_l, 4H)
        whh_t = jnp.asarray(w_hh_list[l], f32).T          # (H, 4H)
        bias = jnp.asarray(b_ih_list[l], f32) + jnp.asarray(b_hh_list[l], f32)
        in_l = wih_t.shape[0]
        for g in range(4):
            w = w.at[l, 0:in_l, g * Hp:g * Hp + H].set(wih_t[:, g * H:(g + 1) * H])
            w = w.at[l, R:R + H, g * Hp:g * Hp + H].set(whh_t[:, g * H:(g + 1) * H])
            b = b.at[l, 0, g * Hp:g * Hp + H].set(bias[g * H:(g + 1) * H])
    return w.astype(param_dtype), b


def multi_layer_lstm_cell_seq(xs, h0, c0, w_packed, b_packed, *, hidden_size):
    """Apply the MultiLayerLSTMCell forward at T consecutive time steps.

    xs: (T, B, input_size) external inputs; h0, c0: (B, hidden, L) PyTorch layout.
    Weights stay VMEM-resident across the T grid steps; h/c state is carried in VMEM
    scratch.  Returns (h_seq, c_seq), each (T, B, hidden, L) — step t equals the
    module's forward applied to (xs[t], state after step t-1).
    """
    f32 = jnp.float32
    T, B, D = xs.shape
    H = int(hidden_size)
    L = h0.shape[2]
    Kp = w_packed.shape[1]
    Hp = w_packed.shape[2] // 4
    R = max(D, H)                       # must match pack_mlstm_params
    Bp = _round_up(B, 8)                # f32 sublane multiple -> unmasked stores

    # One-time (per sequence) conversion to the canonical padded layout.
    xs_p = jnp.zeros((T, Bp, R), f32).at[:, :B, :D].set(xs.astype(f32))
    h0_p = jnp.zeros((L, Bp, Hp), f32).at[:, :B, :H].set(
        jnp.transpose(h0.astype(f32), (2, 0, 1)))
    c0_p = jnp.zeros((L, Bp, Hp), f32).at[:, :B, :H].set(
        jnp.transpose(c0.astype(f32), (2, 0, 1)))

    # Explicit VMEM budget: everything below must fit resident (v7x: 64 MiB physical).
    wsz = w_packed.dtype.itemsize
    resident_bytes = (L * Kp * 4 * Hp * wsz        # weights (resident)
                      + L * 4 * Hp * 4             # bias (resident)
                      + 2 * L * Bp * Hp * 4        # h0/c0 (resident)
                      + 2 * Bp * R * 4             # x block (double-buffered)
                      + 2 * 2 * L * Bp * Hp * 4    # h/c out blocks (double-buffered)
                      + 2 * L * Bp * Hp * 4        # h/c state scratch
                      + Bp * Kp * wsz)             # fused carry scratch
    # TODO(synk): for large H*L add a layer-grid + 4*Hp tiling fallback path.
    assert resident_bytes < 24 * 1024 * 1024, (
        "all-layers-resident weights exceed the VMEM budget; re-tile with a layer grid")

    kernel = functools.partial(_mlstm_seq_kernel, hidden_size=H, h_row_offset=R)

    h_seq, c_seq = pl.pallas_call(
        kernel,
        out_shape=(jax.ShapeDtypeStruct((T, L, Bp, Hp), f32),
                   jax.ShapeDtypeStruct((T, L, Bp, Hp), f32)),
        grid=(T,),
        in_specs=[
            pl.BlockSpec((None, Bp, R), lambda t: (t, 0, 0)),        # x_t (per step)
            pl.BlockSpec((L, Bp, Hp), lambda t: (0, 0, 0)),          # h0 (resident)
            pl.BlockSpec((L, Bp, Hp), lambda t: (0, 0, 0)),          # c0 (resident)
            pl.BlockSpec((L, Kp, 4 * Hp), lambda t: (0, 0, 0)),      # weights (resident)
            pl.BlockSpec((L, 1, 4 * Hp), lambda t: (0, 0, 0)),       # bias (resident)
        ],
        out_specs=(
            pl.BlockSpec((None, L, Bp, Hp), lambda t: (t, 0, 0, 0)),
            pl.BlockSpec((None, L, Bp, Hp), lambda t: (t, 0, 0, 0)),
        ),
        scratch_shapes=[
            pltpu.VMEM((L, Bp, Hp), f32),           # h state across time steps
            pltpu.VMEM((L, Bp, Hp), f32),           # c state across time steps
            pltpu.VMEM((Bp, Kp), w_packed.dtype),   # fused [input ; h_prev] MXU operand
        ],
        compiler_params=pltpu.CompilerParams(
            dimension_semantics=("arbitrary",),     # serial time recurrence
            vmem_limit_bytes=32 * 1024 * 1024,
        ),
        # TODO(synk): on v7x, add a leading parallel batch/sequence grid axis to
        # engage the second TensorCore when >=2 independent sequences are available.
    )(xs_p, h0_p, c0_p, w_packed, b_packed)

    # (T, L, Bp, Hp) -> (T, B, H, L): matches torch.stack(...).permute(1, 2, 0) per step.
    h_seq = jnp.transpose(h_seq[:, :, :B, :H], (0, 2, 3, 1))
    c_seq = jnp.transpose(c_seq[:, :, :B, :H], (0, 2, 3, 1))
    return h_seq, c_seq


def multi_layer_lstm_cell(x, h0, c0, w_packed, b_packed, *, hidden_size):
    """Module-equivalent single step.  x: (B, input_size); h0, c0: (B, hidden, L).
    Returns (next_hidden, next_cell), each (B, hidden, L)."""
    h_seq, c_seq = multi_layer_lstm_cell_seq(x[None], h0, c0, w_packed, b_packed,
                                             hidden_size=hidden_size)
    return h_seq[0], c_seq[0]


def _reference_step(x, h0, c0, w_ih_list, w_hh_list, b_ih_list, b_hh_list,
                    matmul_dtype=jnp.float32):
    """Pure-JAX reference mirroring the PyTorch forward (matmul operands optionally
    cast to `matmul_dtype` to mirror the kernel's bf16 MXU path)."""
    f32 = jnp.float32
    H = h0.shape[1]
    L = h0.shape[2]
    nh, nc = [], []
    inp = x.astype(f32)
    for l in range(L):
        hp = h0[:, :, l].astype(f32)
        cp = c0[:, :, l].astype(f32)
        gates = (jnp.dot(inp.astype(matmul_dtype),
                         w_ih_list[l].T.astype(matmul_dtype),
                         preferred_element_type=f32)
                 + jnp.dot(hp.astype(matmul_dtype),
                           w_hh_list[l].T.astype(matmul_dtype),
                           preferred_element_type=f32)
                 + b_ih_list[l] + b_hh_list[l])
        i_g = jax.nn.sigmoid(gates[:, 0:H])
        f_g = jax.nn.sigmoid(gates[:, H:2 * H])
        g_g = jnp.tanh(gates[:, 2 * H:3 * H])
        o_g = jax.nn.sigmoid(gates[:, 3 * H:4 * H])
        cn = f_g * cp + i_g * g_g
        hn = o_g * jnp.tanh(cn)
        inp = hn
        nh.append(hn)
        nc.append(cn)
    return (jnp.transpose(jnp.stack(nh), (1, 2, 0)),
            jnp.transpose(jnp.stack(nc), (1, 2, 0)))


if __name__ == "__main__":
    B, D, H, L, T = 4, 24, 32, 3, 6

    key = jax.random.PRNGKey(0)
    keys = jax.random.split(key, 3 + 4 * L)
    xs = jax.random.normal(keys[0], (T, B, D), jnp.float32)
    h0 = jax.random.normal(keys[1], (B, H, L), jnp.float32)
    c0 = jax.random.normal(keys[2], (B, H, L), jnp.float32)

    w_ih_list, w_hh_list, b_ih_list, b_hh_list = [], [], [], []
    k = 3
    for l in range(L):
        in_l = D if l == 0 else H
        scale = 1.0 / jnp.sqrt(jnp.float32(H))
        w_ih_list.append(scale * jax.random.normal(keys[k + 0], (4 * H, in_l), jnp.float32))
        w_hh_list.append(scale * jax.random.normal(keys[k + 1], (4 * H, H), jnp.float32))
        b_ih_list.append(scale * jax.random.normal(keys[k + 2], (4 * H,), jnp.float32))
        b_hh_list.append(scale * jax.random.normal(keys[k + 3], (4 * H,), jnp.float32))
        k += 4

    step_fn = jax.jit(multi_layer_lstm_cell, static_argnames=("hidden_size",))
    seq_fn = jax.jit(multi_layer_lstm_cell_seq, static_argnames=("hidden_size",))

    # 1) Exact-math path: f32 packed weights, single step vs. pure-f32 reference
    #    (module-equivalent forward).
    w32, b32 = pack_mlstm_params(w_ih_list, w_hh_list, b_ih_list, b_hh_list,
                                 param_dtype=jnp.float32)
    h1, c1 = step_fn(xs[0], h0, c0, w32, b32, hidden_size=H)
    jax.block_until_ready((h1, c1))
    h1_ref, c1_ref = _reference_step(xs[0], h0, c0, w_ih_list, w_hh_list,
                                     b_ih_list, b_hh_list)
    assert h1.shape == (B, H, L) and c1.shape == (B, H, L)
    assert jnp.allclose(h1, h1_ref, atol=1e-5, rtol=1e-5)
    assert jnp.allclose(c1, c1_ref, atol=1e-5, rtol=1e-5)

    # 2) Sequence path (weights VMEM-resident across the T grid steps), f32 weights.
    h_seq, c_seq = seq_fn(xs, h0, c0, w32, b32, hidden_size=H)
    jax.block_until_ready((h_seq, c_seq))
    assert h_seq.shape == (T, B, H, L) and c_seq.shape == (T, B, H, L)
    h_r, c_r = h0, c0
    for t in range(T):
        h_r, c_r = _reference_step(xs[t], h_r, c_r, w_ih_list, w_hh_list,
                                   b_ih_list, b_hh_list)
        assert jnp.allclose(h_seq[t], h_r, atol=1e-5, rtol=1e-5)
        assert jnp.allclose(c_seq[t], c_r, atol=1e-5, rtol=1e-5)

    # 3) Perf path: bf16 MXU operands (f32 accumulation, f32 gate math / state) vs. a
    #    reference using the same bf16 matmul-operand precision.
    w16, b16 = pack_mlstm_params(w_ih_list, w_hh_list, b_ih_list, b_hh_list,
                                 param_dtype=jnp.bfloat16)
    h_seq16, c_seq16 = seq_fn(xs, h0, c0, w16, b16, hidden_size=H)
    jax.block_until_ready((h_seq16, c_seq16))
    h_r, c_r = h0, c0
    for t in range(T):
        h_r, c_r = _reference_step(xs[t], h_r, c_r, w_ih_list, w_hh_list,
                                   b_ih_list, b_hh_list, matmul_dtype=jnp.bfloat16)
        assert jnp.allclose(h_seq16[t], h_r, atol=5e-3, rtol=5e-3)
        assert jnp.allclose(c_seq16[t], c_r, atol=5e-3, rtol=5e-3)

    print("KERNEL_OK")
</pallas_src>

<mosaic_0001>
module attributes {stable_mosaic.version = 11 : i64} {
  func.func @_mlstm_seq_kernel(%arg0: i32, %arg1: memref<1x8x32xf32, #tpu.memory_space<vmem>>, %arg2: memref<3x8x128xf32, #tpu.memory_space<vmem>>, %arg3: memref<3x8x128xf32, #tpu.memory_space<vmem>>, %arg4: memref<3x128x512xf32, #tpu.memory_space<vmem>>, %arg5: memref<3x1x512xf32, #tpu.memory_space<vmem>>, %arg6: memref<1x3x8x128xf32, #tpu.memory_space<vmem>>, %arg7: memref<1x3x8x128xf32, #tpu.memory_space<vmem>>, %arg8: memref<3x8x128xf32, #tpu.memory_space<vmem>>, %arg9: memref<3x8x128xf32, #tpu.memory_space<vmem>>, %arg10: memref<8x128xf32, #tpu.memory_space<vmem>>) attributes {dimension_semantics = [#tpu.dimension_semantics<arbitrary>], iteration_bounds = array<i64: 1>, scalar_prefetch = 0 : i64, scratch_operands = 3 : i64, tpu.core_type = #tpu.core_type<tc>, window_params = [{transform_indices = @transform_0, window_bounds = array<i64: 1, 8, 32>}, {pipeline_mode = #tpu.pipeline_mode<synchronous>, transform_indices = @transform_1, window_bounds = array<i64: 3, 8, 128>}, {pipeline_mode = #tpu.pipeline_mode<synchronous>, transform_indices = @transform_2, window_bounds = array<i64: 3, 8, 128>}, {pipeline_mode = #tpu.pipeline_mode<synchronous>, transform_indices = @transform_3, window_bounds = array<i64: 3, 128, 512>}, {pipeline_mode = #tpu.pipeline_mode<synchronous>, transform_indices = @transform_4, window_bounds = array<i64: 3, 1, 512>}, {transform_indices = @transform_5, window_bounds = array<i64: 1, 3, 8, 128>}, {transform_indices = @transform_6, window_bounds = array<i64: 1, 3, 8, 128>}]} {
    %c0_i32 = arith.constant 0 : i32
    %0 = arith.cmpi eq, %arg0, %c0_i32 : i32
    %1 = arith.extui %0 : i1 to i32
    %c0_i32_0 = arith.constant 0 : i32
    %2 = arith.cmpi ne, %1, %c0_i32_0 : i32
    scf.if %2 {
      %cst_107 = arith.constant 0.000000e+00 : f32
      %160 = vector.broadcast %cst_107 : f32 to vector<8x128xf32>
      %c0_108 = arith.constant 0 : index
      %c0_109 = arith.constant 0 : index
      %161 = vector.load %arg10[%c0_108, %c0_109] : memref<8x128xf32, #tpu.memory_space<vmem>>, vector<8x128xf32>
      tpu.vector_store %arg10[%c0_108, %c0_109], %160 {strides = array<i32>} : memref<8x128xf32, #tpu.memory_space<vmem>>, vector<8x128xf32>,
      %c0_110 = arith.constant 0 : index
      %c0_111 = arith.constant 0 : index
      %c0_112 = arith.constant 0 : index
      %162 = vector.load %arg2[%c0_110, %c0_111, %c0_112] : memref<3x8x128xf32, #tpu.memory_space<vmem>>, vector<3x8x128xf32>
      %c0_113 = arith.constant 0 : index
      %c0_114 = arith.constant 0 : index
      %c0_115 = arith.constant 0 : index
      %163 = vector.load %arg8[%c0_113, %c0_114, %c0_115] : memref<3x8x128xf32, #tpu.memory_space<vmem>>, vector<3x8x128xf32>
      tpu.vector_store %arg8[%c0_113, %c0_114, %c0_115], %162 {strides = array<i32>} : memref<3x8x128xf32, #tpu.memory_space<vmem>>, vector<3x8x128xf32>,
      %c0_116 = arith.constant 0 : index
      %c0_117 = arith.constant 0 : index
      %c0_118 = arith.constant 0 : index
      %164 = vector.load %arg3[%c0_116, %c0_117, %c0_118] : memref<3x8x128xf32, #tpu.memory_space<vmem>>, vector<3x8x128xf32>
      %c0_119 = arith.constant 0 : index
      %c0_120 = arith.constant 0 : index
      %c0_121 = arith.constant 0 : index
      %165 = vector.load %arg9[%c0_119, %c0_120, %c0_121] : memref<3x8x128xf32, #tpu.memory_space<vmem>>, vector<3x8x128xf32>
      tpu.vector_store %arg9[%c0_119, %c0_120, %c0_121], %164 {strides = array<i32>} : memref<3x8x128xf32, #tpu.memory_space<vmem>>, vector<3x8x128xf32>,
    } else {
    }
    %c0 = arith.constant 0 : index
    %c0_1 = arith.constant 0 : index
    %c0_2 = arith.constant 0 : index
    %3 = vector.load %arg1[%c0, %c0_1, %c0_2] : memref<1x8x32xf32, #tpu.memory_space<vmem>>, vector<1x8x32xf32>
    %4 = vector.shape_cast %3 : vector<1x8x32xf32> to vector<8x32xf32>
    %c0_3 = arith.constant 0 : index
    %c0_4 = arith.constant 0 : index
    %5 = vector.load %arg10[%c0_3, %c0_4] : memref<8x128xf32, #tpu.memory_space<vmem>>, vector<8x32xf32>
    tpu.vector_store %arg10[%c0_3, %c0_4], %4 {strides = array<i32>} : memref<8x128xf32, #tpu.memory_space<vmem>>, vector<8x32xf32>,
    %c0_5 = arith.constant 0 : index
    %c0_6 = arith.constant 0 : index
    %c0_7 = arith.constant 0 : index
    %6 = vector.load %arg8[%c0_5, %c0_6, %c0_7] : memref<3x8x128xf32, #tpu.memory_space<vmem>>, vector<1x8x32xf32>
    %7 = vector.shape_cast %6 : vector<1x8x32xf32> to vector<8x32xf32>
    %c0_8 = arith.constant 0 : index
    %c32 = arith.constant 32 : index
    %8 = vector.load %arg10[%c0_8, %c32] : memref<8x128xf32, #tpu.memory_space<vmem>>, vector<8x32xf32>
    tpu.vector_store %arg10[%c0_8, %c32], %7 {strides = array<i32>} : memref<8x128xf32, #tpu.memory_space<vmem>>, vector<8x32xf32>,
    %c0_9 = arith.constant 0 : index
    %c0_10 = arith.constant 0 : index
    %c0_11 = arith.constant 0 : index
    %9 = vector.load %arg9[%c0_9, %c0_10, %c0_11] : memref<3x8x128xf32, #tpu.memory_space<vmem>>, vector<1x8x128xf32>
    %10 = vector.shape_cast %9 : vector<1x8x128xf32> to vector<8x128xf32>
    %c0_12 = arith.constant 0 : index
    %c0_13 = arith.constant 0 : index
    %11 = vector.load %arg10[%c0_12, %c0_13] : memref<8x128xf32, #tpu.memory_space<vmem>>, vector<8x128xf32>
    %c0_14 = arith.constant 0 : index
    %c0_15 = arith.constant 0 : index
    %c0_16 = arith.constant 0 : index
    %12 = vector.load %arg4[%c0_14, %c0_15, %c0_16] : memref<3x128x512xf32, #tpu.memory_space<vmem>>, vector<1x128x512xf32>
    %13 = vector.shape_cast %12 : vector<1x128x512xf32> to vector<128x512xf32>
    %cst = arith.constant dense<0.000000e+00> : vector<8x512xf32>
    %14 = tpu.matmul %11, %13, %cst {dimension_numbers = #tpu.dot_dimension_numbers<[1], [0], [0], [1], [0, 0, 1, 1], [], []>} : vector<8x128xf32>, vector<128x512xf32>, vector<8x512xf32> -> vector<8x512xf32>
    %c0_17 = arith.constant 0 : index
    %c0_18 = arith.constant 0 : index
    %c0_19 = arith.constant 0 : index
    %15 = vector.load %arg5[%c0_17, %c0_18, %c0_19] : memref<3x1x512xf32, #tpu.memory_space<vmem>>, vector<1x1x512xf32>
    %16 = vector.shape_cast %15 : vector<1x1x512xf32> to vector<1x512xf32>
    %17 = vector.broadcast %16 : vector<1x512xf32> to vector<8x512xf32>
    %18 = arith.addf %14, %17 : vector<8x512xf32>
    %19 = vector.extract_strided_slice %18 {offsets = [0, 0], sizes = [8, 128], strides = [1, 1]} : vector<8x512xf32> to vector<8x128xf32>
    %20 = arith.negf %19 : vector<8x128xf32>
    %21 = math.exp %20 : vector<8x128xf32>
    %cst_20 = arith.constant 1.000000e+00 : f32
    %22 = vector.broadcast %cst_20 : f32 to vector<8x128xf32>
    %23 = arith.addf %22, %21 : vector<8x128xf32>
    %24 = arith.divf %22, %23 : vector<8x128xf32>
    %25 = vector.extract_strided_slice %18 {offsets = [0, 128], sizes = [8, 128], strides = [1, 1]} : vector<8x512xf32> to vector<8x128xf32>
    %26 = arith.negf %25 : vector<8x128xf32>
    %27 = math.exp %26 : vector<8x128xf32>
    %cst_21 = arith.constant 1.000000e+00 : f32
    %28 = vector.broadcast %cst_21 : f32 to vector<8x128xf32>
    %29 = arith.addf %28, %27 : vector<8x128xf32>
    %30 = arith.divf %28, %29 : vector<8x128xf32>
    %31 = vector.extract_strided_slice %18 {offsets = [0, 256], sizes = [8, 128], strides = [1, 1]} : vector<8x512xf32> to vector<8x128xf32>
    %32 = math.tanh %31 : vector<8x128xf32>
    %33 = vector.extract_strided_slice %18 {offsets = [0, 384], sizes = [8, 128], strides = [1, 1]} : vector<8x512xf32> to vector<8x128xf32>
    %34 = arith.negf %33 : vector<8x128xf32>
    %35 = math.exp %34 : vector<8x128xf32>
    %cst_22 = arith.constant 1.000000e+00 : f32
    %36 = vector.broadcast %cst_22 : f32 to vector<8x128xf32>
    %37 = arith.addf %36, %35 : vector<8x128xf32>
    %38 = arith.divf %36, %37 : vector<8x128xf32>
    %39 = arith.mulf %30, %10 : vector<8x128xf32>
    %40 = arith.mulf %24, %32 : vector<8x128xf32>
    %41 = arith.addf %39, %40 : vector<8x128xf32>
    %42 = math.tanh %41 : vector<8x128xf32>
    %43 = arith.mulf %38, %42 : vector<8x128xf32>
    %c0_23 = arith.constant 0 : index
    %c0_24 = arith.constant 0 : index
    %c0_25 = arith.constant 0 : index
    %44 = vector.load %arg8[%c0_23, %c0_24, %c0_25] : memref<3x8x128xf32, #tpu.memory_space<vmem>>, vector<1x8x128xf32>
    %45 = vector.shape_cast %44 : vector<1x8x128xf32> to vector<8x128xf32>
    %46 = vector.shape_cast %43 : vector<8x128xf32> to vector<1x8x128xf32>
    tpu.vector_store %arg8[%c0_23, %c0_24, %c0_25], %46 {strides = array<i32>} : memref<3x8x128xf32, #tpu.memory_space<vmem>>, vector<1x8x128xf32>,
    %c0_26 = arith.constant 0 : index
    %c0_27 = arith.constant 0 : index
    %c0_28 = arith.constant 0 : index
    %47 = vector.load %arg9[%c0_26, %c0_27, %c0_28] : memref<3x8x128xf32, #tpu.memory_space<vmem>>, vector<1x8x128xf32>
    %48 = vector.shape_cast %47 : vector<1x8x128xf32> to vector<8x128xf32>
    %49 = vector.shape_cast %41 : vector<8x128xf32> to vector<1x8x128xf32>
    tpu.vector_store %arg9[%c0_26, %c0_27, %c0_28], %49 {strides = array<i32>} : memref<3x8x128xf32, #tpu.memory_space<vmem>>, vector<1x8x128xf32>,
    %c0_29 = arith.constant 0 : index
    %c0_30 = arith.constant 0 : index
    %c0_31 = arith.constant 0 : index
    %c0_32 = arith.constant 0 : index
    %50 = vector.load %arg6[%c0_29, %c0_30, %c0_31, %c0_32] : memref<1x3x8x128xf32, #tpu.memory_space<vmem>>, vector<1x1x8x128xf32>
    %51 = vector.shape_cast %50 : vector<1x1x8x128xf32> to vector<8x128xf32>
    %52 = vector.shape_cast %43 : vector<8x128xf32> to vector<1x1x8x128xf32>
    tpu.vector_store %arg6[%c0_29, %c0_30, %c0_31, %c0_32], %52 {strides = array<i32>} : memref<1x3x8x128xf32, #tpu.memory_space<vmem>>, vector<1x1x8x128xf32>,
    %c0_33 = arith.constant 0 : index
    %c0_34 = arith.constant 0 : index
    %c0_35 = arith.constant 0 : index
    %c0_36 = arith.constant 0 : index
    %53 = vector.load %arg7[%c0_33, %c0_34, %c0_35, %c0_36] : memref<1x3x8x128xf32, #tpu.memory_space<vmem>>, vector<1x1x8x128xf32>
    %54 = vector.shape_cast %53 : vector<1x1x8x128xf32> to vector<8x128xf32>
    %55 = vector.shape_cast %41 : vector<8x128xf32> to vector<1x1x8x128xf32>
    tpu.vector_store %arg7[%c0_33, %c0_34, %c0_35, %c0_36], %55 {strides = array<i32>} : memref<1x3x8x128xf32, #tpu.memory_space<vmem>>, vector<1x1x8x128xf32>,
    %56 = vector.extract_strided_slice %43 {offsets = [0, 0], sizes = [8, 32], strides = [1, 1]} : vector<8x128xf32> to vector<8x32xf32>
    %c0_37 = arith.constant 0 : index
    %c0_38 = arith.constant 0 : index
    %57 = vector.load %arg10[%c0_37, %c0_38] : memref<8x128xf32, #tpu.memory_space<vmem>>, vector<8x32xf32>
    tpu.vector_store %arg10[%c0_37, %c0_38], %56 {strides = array<i32>} : memref<8x128xf32, #tpu.memory_space<vmem>>, vector<8x32xf32>,
    %c1 = arith.constant 1 : index
    %c0_39 = arith.constant 0 : index
    %c0_40 = arith.constant 0 : index
    %58 = vector.load %arg8[%c1, %c0_39, %c0_40] : memref<3x8x128xf32, #tpu.memory_space<vmem>>, vector<1x8x32xf32>
    %59 = vector.shape_cast %58 : vector<1x8x32xf32> to vector<8x32xf32>
    %c0_41 = arith.constant 0 : index
    %c32_42 = arith.constant 32 : index
    %60 = vector.load %arg10[%c0_41, %c32_42] : memref<8x128xf32, #tpu.memory_space<vmem>>, vector<8x32xf32>
    tpu.vector_store %arg10[%c0_41, %c32_42], %59 {strides = array<i32>} : memref<8x128xf32, #tpu.memory_space<vmem>>, vector<8x32xf32>,
    %c1_43 = arith.constant 1 : index
    %c0_44 = arith.constant 0 : index
    %c0_45 = arith.constant 0 : index
    %61 = vector.load %arg9[%c1_43, %c0_44, %c0_45] : memref<3x8x128xf32, #tpu.memory_space<vmem>>, vector<1x8x128xf32>
    %62 = vector.shape_cast %61 : vector<1x8x128xf32> to vector<8x128xf32>
    %c0_46 = arith.constant 0 : index
    %c0_47 = arith.constant 0 : index
    %63 = vector.load %arg10[%c0_46, %c0_47] : memref<8x128xf32, #tpu.memory_space<vmem>>, vector<8x128xf32>
    %c1_48 = arith.constant 1 : index
    %c0_49 = arith.constant 0 : index
    %c0_50 = arith.constant 0 : index
    %64 = vector.load %arg4[%c1_48, %c0_49, %c0_50] : memref<3x128x512xf32, #tpu.memory_space<vmem>>, vector<1x128x512xf32>
    %65 = vector.shape_cast %64 : vector<1x128x512xf32> to vector<128x512xf32>
    %cst_51 = arith.constant dense<0.000000e+00> : vector<8x512xf32>
    %66 = tpu.matmul %63, %65, %cst_51 {dimension_numbers = #tpu.dot_dimension_numbers<[1], [0], [0], [1], [0, 0, 1, 1], [], []>} : vector<8x128xf32>, vector<128x512xf32>, vector<8x512xf32> -> vector<8x512xf32>
    %c1_52 = arith.constant 1 : index
    %c0_53 = arith.constant 0 : index
    %c0_54 = arith.constant 0 : index
    %67 = vector.load %arg5[%c1_52, %c0_53, %c0_54] : memref<3x1x512xf32, #tpu.memory_space<vmem>>, vector<1x1x512xf32>
    %68 = vector.shape_cast %67 : vector<1x1x512xf32> to vector<1x512xf32>
    %69 = vector.broadcast %68 : vector<1x512xf32> to vector<8x512xf32>
    %70 = arith.addf %66, %69 : vector<8x512xf32>
    %71 = vector.extract_strided_slice %70 {offsets = [0, 0], sizes = [8, 128], strides = [1, 1]} : vector<8x512xf32> to vector<8x128xf32>
    %72 = arith.negf %71 : vector<8x128xf32>
    %73 = math.exp %72 : vector<8x128xf32>
    %cst_55 = arith.constant 1.000000e+00 : f32
    %74 = vector.broadcast %cst_55 : f32 to vector<8x128xf32>
    %75 = arith.addf %74, %73 : vector<8x128xf32>
    %76 = arith.divf %74, %75 : vector<8x128xf32>
    %77 = vector.extract_strided_slice %70 {offsets = [0, 128], sizes = [8, 128], strides = [1, 1]} : vector<8x512xf32> to vector<8x128xf32>
    %78 = arith.negf %77 : vector<8x128xf32>
    %79 = math.exp %78 : vector<8x128xf32>
    %cst_56 = arith.constant 1.000000e+00 : f32
    %80 = vector.broadcast %cst_56 : f32 to vector<8x128xf32>
    %81 = arith.addf %80, %79 : vector<8x128xf32>
    %82 = arith.divf %80, %81 : vector<8x128xf32>
    %83 = vector.extract_strided_slice %70 {offsets = [0, 256], sizes = [8, 128], strides = [1, 1]} : vector<8x512xf32> to vector<8x128xf32>
    %84 = math.tanh %83 : vector<8x128xf32>
    %85 = vector.extract_strided_slice %70 {offsets = [0, 384], sizes = [8, 128], strides = [1, 1]} : vector<8x512xf32> to vector<8x128xf32>
    %86 = arith.negf %85 : vector<8x128xf32>
    %87 = math.exp %86 : vector<8x128xf32>
    %cst_57 = arith.constant 1.000000e+00 : f32
    %88 = vector.broadcast %cst_57 : f32 to vector<8x128xf32>
    %89 = arith.addf %88, %87 : vector<8x128xf32>
    %90 = arith.divf %88, %89 : vector<8x128xf32>
    %91 = arith.mulf %82, %62 : vector<8x128xf32>
    %92 = arith.mulf %76, %84 : vector<8x128xf32>
    %93 = arith.addf %91, %92 : vector<8x128xf32>
    %94 = math.tanh %93 : vector<8x128xf32>
    %95 = arith.mulf %90, %94 : vector<8x128xf32>
    %c1_58 = arith.constant 1 : index
    %c0_59 = arith.constant 0 : index
    %c0_60 = arith.constant 0 : index
    %96 = vector.load %arg8[%c1_58, %c0_59, %c0_60] : memref<3x8x128xf32, #tpu.memory_space<vmem>>, vector<1x8x128xf32>
    %97 = vector.shape_cast %96 : vector<1x8x128xf32> to vector<8x128xf32>
    %98 = vector.shape_cast %95 : vector<8x128xf32> to vector<1x8x128xf32>
    tpu.vector_store %arg8[%c1_58, %c0_59, %c0_60], %98 {strides = array<i32>} : memref<3x8x128xf32, #tpu.memory_space<vmem>>, vector<1x8x128xf32>,
    %c1_61 = arith.constant 1 : index
    %c0_62 = arith.constant 0 : index
    %c0_63 = arith.constant 0 : index
    %99 = vector.load %arg9[%c1_61, %c0_62, %c0_63] : memref<3x8x128xf32, #tpu.memory_space<vmem>>, vector<1x8x128xf32>
    %100 = vector.shape_cast %99 : vector<1x8x128xf32> to vector<8x128xf32>
    %101 = vector.shape_cast %93 : vector<8x128xf32> to vector<1x8x128xf32>
    tpu.vector_store %arg9[%c1_61, %c0_62, %c0_63], %101 {strides = array<i32>} : memref<3x8x128xf32, #tpu.memory_space<vmem>>, vector<1x8x128xf32>,
    %c0_64 = arith.constant 0 : index
    %c1_65 = arith.constant 1 : index
    %c0_66 = arith.constant 0 : index
    %c0_67 = arith.constant 0 : index
    %102 = vector.load %arg6[%c0_64, %c1_65, %c0_66, %c0_67] : memref<1x3x8x128xf32, #tpu.memory_space<vmem>>, vector<1x1x8x128xf32>
    %103 = vector.shape_cast %102 : vector<1x1x8x128xf32> to vector<8x128xf32>
    %104 = vector.shape_cast %95 : vector<8x128xf32> to vector<1x1x8x128xf32>
    tpu.vector_store %arg6[%c0_64, %c1_65, %c0_66, %c0_67], %104 {strides = array<i32>} : memref<1x3x8x128xf32, #tpu.memory_space<vmem>>, vector<1x1x8x128xf32>,
    %c0_68 = arith.constant 0 : index
    %c1_69 = arith.constant 1 : index
    %c0_70 = arith.constant 0 : index
    %c0_71 = arith.constant 0 : index
    %105 = vector.load %arg7[%c0_68, %c1_69, %c0_70, %c0_71] : memref<1x3x8x128xf32, #tpu.memory_space<vmem>>, vector<1x1x8x128xf32>
    %106 = vector.shape_cast %105 : vector<1x1x8x128xf32> to vector<8x128xf32>
    %107 = vector.shape_cast %93 : vector<8x128xf32> to vector<1x1x8x128xf32>
    tpu.vector_store %arg7[%c0_68, %c1_69, %c0_70, %c0_71], %107 {strides = array<i32>} : memref<1x3x8x128xf32, #tpu.memory_space<vmem>>, vector<1x1x8x128xf32>,
    %108 = vector.extract_strided_slice %95 {offsets = [0, 0], sizes = [8, 32], strides = [1, 1]} : vector<8x128xf32> to vector<8x32xf32>
    %c0_72 = arith.constant 0 : index
    %c0_73 = arith.constant 0 : index
    %109 = vector.load %arg10[%c0_72, %c0_73] : memref<8x128xf32, #tpu.memory_space<vmem>>, vector<8x32xf32>
    tpu.vector_store %arg10[%c0_72, %c0_73], %108 {strides = array<i32>} : memref<8x128xf32, #tpu.memory_space<vmem>>, vector<8x32xf32>,
    %c2 = arith.constant 2 : index
    %c0_74 = arith.constant 0 : index
    %c0_75 = arith.constant 0 : index
    %110 = vector.load %arg8[%c2, %c0_74, %c0_75] : memref<3x8x128xf32, #tpu.memory_space<vmem>>, vector<1x8x32xf32>
    %111 = vector.shape_cast %110 : vector<1x8x32xf32> to vector<8x32xf32>
    %c0_76 = arith.constant 0 : index
    %c32_77 = arith.constant 32 : index
    %112 = vector.load %arg10[%c0_76, %c32_77] : memref<8x128xf32, #tpu.memory_space<vmem>>, vector<8x32xf32>
    tpu.vector_store %arg10[%c0_76, %c32_77], %111 {strides = array<i32>} : memref<8x128xf32, #tpu.memory_space<vmem>>, vector<8x32xf32>,
    %c2_78 = arith.constant 2 : index
    %c0_79 = arith.constant 0 : index
    %c0_80 = arith.constant 0 : index
    %113 = vector.load %arg9[%c2_78, %c0_79, %c0_80] : memref<3x8x128xf32, #tpu.memory_space<vmem>>, vector<1x8x128xf32>
    %114 = vector.shape_cast %113 : vector<1x8x128xf32> to vector<8x128xf32>
    %c0_81 = arith.constant 0 : index
    %c0_82 = arith.constant 0 : index
    %115 = vector.load %arg10[%c0_81, %c0_82] : memref<8x128xf32, #tpu.memory_space<vmem>>, vector<8x128xf32>
    %c2_83 = arith.constant 2 : index
    %c0_84 = arith.constant 0 : index
    %c0_85 = arith.constant 0 : index
    %116 = vector.load %arg4[%c2_83, %c0_84, %c0_85] : memref<3x128x512xf32, #tpu.memory_space<vmem>>, vector<1x128x512xf32>
    %117 = vector.shape_cast %116 : vector<1x128x512xf32> to vector<128x512xf32>
    %cst_86 = arith.constant dense<0.000000e+00> : vector<8x512xf32>
    %118 = tpu.matmul %115, %117, %cst_86 {dimension_numbers = #tpu.dot_dimension_numbers<[1], [0], [0], [1], [0, 0, 1, 1], [], []>} : vector<8x128xf32>, vector<128x512xf32>, vector<8x512xf32> -> vector<8x512xf32>
    %c2_87 = arith.constant 2 : index
    %c0_88 = arith.constant 0 : index
    %c0_89 = arith.constant 0 : index
    %119 = vector.load %arg5[%c2_87, %c0_88, %c0_89] : memref<3x1x512xf32, #tpu.memory_space<vmem>>, vector<1x1x512xf32>
    %120 = vector.shape_cast %119 : vector<1x1x512xf32> to vector<1x512xf32>
    %121 = vector.broadcast %120 : vector<1x512xf32> to vector<8x512xf32>
    %122 = arith.addf %118, %121 : vector<8x512xf32>
    %123 = vector.extract_strided_slice %122 {offsets = [0, 0], sizes = [8, 128], strides = [1, 1]} : vector<8x512xf32> to vector<8x128xf32>
    %124 = arith.negf %123 : vector<8x128xf32>
    %125 = math.exp %124 : vector<8x128xf32>
    %cst_90 = arith.constant 1.000000e+00 : f32
    %126 = vector.broadcast %cst_90 : f32 to vector<8x128xf32>
    %127 = arith.addf %126, %125 : vector<8x128xf32>
    %128 = arith.divf %126, %127 : vector<8x128xf32>
    %129 = vector.extract_strided_slice %122 {offsets = [0, 128], sizes = [8, 128], strides = [1, 1]} : vector<8x512xf32> to vector<8x128xf32>
    %130 = arith.negf %129 : vector<8x128xf32>
    %131 = math.exp %130 : vector<8x128xf32>
    %cst_91 = arith.constant 1.000000e+00 : f32
    %132 = vector.broadcast %cst_91 : f32 to vector<8x128xf32>
    %133 = arith.addf %132, %131 : vector<8x128xf32>
    %134 = arith.divf %132, %133 : vector<8x128xf32>
    %135 = vector.extract_strided_slice %122 {offsets = [0, 256], sizes = [8, 128], strides = [1, 1]} : vector<8x512xf32> to vector<8x128xf32>
    %136 = math.tanh %135 : vector<8x128xf32>
    %137 = vector.extract_strided_slice %122 {offsets = [0, 384], sizes = [8, 128], strides = [1, 1]} : vector<8x512xf32> to vector<8x128xf32>
    %138 = arith.negf %137 : vector<8x128xf32>
    %139 = math.exp %138 : vector<8x128xf32>
    %cst_92 = arith.constant 1.000000e+00 : f32
    %140 = vector.broadcast %cst_92 : f32 to vector<8x128xf32>
    %141 = arith.addf %140, %139 : vector<8x128xf32>
    %142 = arith.divf %140, %141 : vector<8x128xf32>
    %143 = arith.mulf %134, %114 : vector<8x128xf32>
    %144 = arith.mulf %128, %136 : vector<8x128xf32>
    %145 = arith.addf %143, %144 : vector<8x128xf32>
    %146 = math.tanh %145 : vector<8x128xf32>
    %147 = arith.mulf %142, %146 : vector<8x128xf32>
    %c2_93 = arith.constant 2 : index
    %c0_94 = arith.constant 0 : index
    %c0_95 = arith.constant 0 : index
    %148 = vector.load %arg8[%c2_93, %c0_94, %c0_95] : memref<3x8x128xf32, #tpu.memory_space<vmem>>, vector<1x8x128xf32>
    %149 = vector.shape_cast %148 : vector<1x8x128xf32> to vector<8x128xf32>
    %150 = vector.shape_cast %147 : vector<8x128xf32> to vector<1x8x128xf32>
    tpu.vector_store %arg8[%c2_93, %c0_94, %c0_95], %150 {strides = array<i32>} : memref<3x8x128xf32, #tpu.memory_space<vmem>>, vector<1x8x128xf32>,
    %c2_96 = arith.constant 2 : index
    %c0_97 = arith.constant 0 : index
    %c0_98 = arith.constant 0 : index
    %151 = vector.load %arg9[%c2_96, %c0_97, %c0_98] : memref<3x8x128xf32, #tpu.memory_space<vmem>>, vector<1x8x128xf32>
    %152 = vector.shape_cast %151 : vector<1x8x128xf32> to vector<8x128xf32>
    %153 = vector.shape_cast %145 : vector<8x128xf32> to vector<1x8x128xf32>
    tpu.vector_store %arg9[%c2_96, %c0_97, %c0_98], %153 {strides = array<i32>} : memref<3x8x128xf32, #tpu.memory_space<vmem>>, vector<1x8x128xf32>,
    %c0_99 = arith.constant 0 : index
    %c2_100 = arith.constant 2 : index
    %c0_101 = arith.constant 0 : index
    %c0_102 = arith.constant 0 : index
    %154 = vector.load %arg6[%c0_99, %c2_100, %c0_101, %c0_102] : memref<1x3x8x128xf32, #tpu.memory_space<vmem>>, vector<1x1x8x128xf32>
    %155 = vector.shape_cast %154 : vector<1x1x8x128xf32> to vector<8x128xf32>
    %156 = vector.shape_cast %147 : vector<8x128xf32> to vector<1x1x8x128xf32>
    tpu.vector_store %arg6[%c0_99, %c2_100, %c0_101, %c0_102], %156 {strides = array<i32>} : memref<1x3x8x128xf32, #tpu.memory_space<vmem>>, vector<1x1x8x128xf32>,
    %c0_103 = arith.constant 0 : index
    %c2_104 = arith.constant 2 : index
    %c0_105 = arith.constant 0 : index
    %c0_106 = arith.constant 0 : index
    %157 = vector.load %arg7[%c0_103, %c2_104, %c0_105, %c0_106] : memref<1x3x8x128xf32, #tpu.memory_space<vmem>>, vector<1x1x8x128xf32>
    %158 = vector.shape_cast %157 : vector<1x1x8x128xf32> to vector<8x128xf32>
    %159 = vector.shape_cast %145 : vector<8x128xf32> to vector<1x1x8x128xf32>
    tpu.vector_store %arg7[%c0_103, %c2_104, %c0_105, %c0_106], %159 {strides = array<i32>} : memref<1x3x8x128xf32, #tpu.memory_space<vmem>>, vector<1x1x8x128xf32>,
    return
  }
  func.func @transform_0(%arg0: i32) -> (i32, i32, i32) {
    %c0_i32 = arith.constant 0 : i32
    %c0_i32_0 = arith.constant 0 : i32
    %c0_i32_1 = arith.constant 0 : i32
    return %arg0, %c0_i32, %c0_i32_0 : i32, i32, i32
  }
  func.func @transform_1(%arg0: i32) -> (i32, i32, i32) {
    %c0_i32 = arith.constant 0 : i32
    %c0_i32_0 = arith.constant 0 : i32
    %c0_i32_1 = arith.constant 0 : i32
    %c0_i32_2 = arith.constant 0 : i32
    return %c0_i32, %c0_i32_0, %c0_i32_1 : i32, i32, i32
  }
  func.func @transform_2(%arg0: i32) -> (i32, i32, i32) {
    %c0_i32 = arith.constant 0 : i32
    %c0_i32_0 = arith.constant 0 : i32
    %c0_i32_1 = arith.constant 0 : i32
    %c0_i32_2 = arith.constant 0 : i32
    return %c0_i32, %c0_i32_0, %c0_i32_1 : i32, i32, i32
  }
  func.func @transform_3(%arg0: i32) -> (i32, i32, i32) {
    %c0_i32 = arith.constant 0 : i32
    %c0_i32_0 = arith.constant 0 : i32
    %c0_i32_1 = arith.constant 0 : i32
    %c0_i32_2 = arith.constant 0 : i32
    return %c0_i32, %c0_i32_0, %c0_i32_1 : i32, i32, i32
  }
  func.func @transform_4(%arg0: i32) -> (i32, i32, i32) {
    %c0_i32 = arith.constant 0 : i32
    %c0_i32_0 = arith.constant 0 : i32
    %c0_i32_1 = arith.constant 0 : i32
    %c0_i32_2 = arith.constant 0 : i32
    return %c0_i32, %c0_i32_0, %c0_i32_1 : i32, i32, i32
  }
  func.func @transform_5(%arg0: i32) -> (i32, i32, i32, i32) {
    %c0_i32 = arith.constant 0 : i32
    %c0_i32_0 = arith.constant 0 : i32
    %c0_i32_1 = arith.constant 0 : i32
    %c0_i32_2 = arith.constant 0 : i32
    return %arg0, %c0_i32, %c0_i32_0, %c0_i32_1 : i32, i32, i32, i32
  }
  func.func @transform_6(%arg0: i32) -> (i32, i32, i32, i32) {
    %c0_i32 = arith.constant 0 : i32
    %c0_i32_0 = arith.constant 0 : i32
    %c0_i32_1 = arith.constant 0 : i32
    %c0_i32_2 = arith.constant 0 : i32
    return %arg0, %c0_i32, %c0_i32_0, %c0_i32_1 : i32, i32, i32, i32
  }
}

</mosaic_0001>

<bundles_post_ra>
// kernel: multi_layer_lstm_cell.1
= control target key start
LH: loop header
LB: loop body
LE: loop exit
PB: predicated region body
PF: predicated region fallthrough
CT: control target
= control target key end

     0   :  { %12 = vsyncpa [#allocation6], 0  ;;  %s961_s21 = smov [#allocation5]   ;;  %s1088_s0 = inlined_call_operand.vmem [shape: f32[1,8,32], index: 0, kind: input, shape index: {}]   ;;  %s1089_s1 = inlined_call_operand.vmem [shape: f32[3,8,128], index: 1, kind: input, shape index: {}]   ;;  %s1090_s2 = inlined_call_operand.vmem [shape: f32[3,8,128], index: 2, kind: input, shape index: {}]   ;;  %s1091_s3 = inlined_call_operand.hbm [shape: f32[3,128,512], index: 3, kind: input, shape index: {}]   ;;  %s1092_s4 = inlined_call_operand.vmem [shape: f32[3,1,512], index: 4, kind: input, shape index: {}]   ;;  %s1093_s5 = inlined_call_operand.vmem [shape: f32[1,3,8,128], index: 5, kind: output, shape index: {0}]   ;;  %s1094_s6 = inlined_call_operand.vmem [shape: f32[1,3,8,128], index: 6, kind: output, shape index: {1}]  }
   0x1   :  { %s24_s22 = sshll.u32 %s961_s21, 4  ;;  %s25_s22 = int_to_ptr.vmem [resolvable:$true] %s24_s22 }
   0x2   :  { %s947_s23 = scalar_lea.vmem %s25_s22, 24576  ;;  %p952_p1 = scmp.lt.s32.totalorder %s25_s22, %s25_s22 }
   0x3   :  { %p948_p0 = scmp.ne.s32.totalorder %s25_s22, %s947_s23  ;;  %p953_p2 = scmp.lt.s32.totalorder %s947_s23, %s947_s23 }
   0x5   :  { %p954_p3 = por %p953_p2, %p952_p1 }
   0x7   :  { %p955_p4 = pnand %p954_p3, %p948_p0 }
   0x9   :  { %958 = shalt.err (!%p955_p4)
}
   0xa   :  { %s962_s24 = smov 512   ;;  %s963_s25 = smov 32  }
   0xb   :  { %30 = dma.hbm_to_vmem [thread:$0]  %s1091_s3, 24576, %s25_s22, [#allocation6], %s962_s24, %s962_s24, %s963_s25  }
   0xc   :  { %959 = dma.done.wait [#allocation6], 24576  }
   0xd   :  { %960 = vsyncadd [#allocation6], 4294942720  ;;  %v964_v0 = vmov 0.0   ;;  %v41_v1 = vld [vmem:[%s1089_s1] sm:$0xff]  ;;  %v126_v2 = vld [vmem:[#allocation5 + $0x1e8] sm:$0xff]  ;;  %vm54_vm0 = vcmask 261120  }
   0xe   :  { %40 = vst [vmem:[#allocation4] sm:$0xff] %v964_v0  ;;  %215 = vmatprep.mubr.f32.mxu0 %v964_v0  ;;  %286 = vmatprep.mubr.f32.mxu1 %v964_v0  ;;  %v128_v3 = vld [vmem:[#allocation5 + $0x1f8] sm:$0xff]  ;;  %v125_v4 = vld [vmem:[#allocation5 + $0x1e0] sm:$0xff]  ;;  %v127_v5 = vld [vmem:[#allocation5 + $0x1f0] sm:$0xff]  ;;  %vm61_vm1 = vcmask 523520  }
   0xf   :  { %58 = vrot.lane.b32.xlu0 %v41_v1, %s963_s25  ;;  %151 = vmatprep.subr.mxu0 %v126_v2  ;;  %v122_v6 = vld [vmem:[#allocation5 + $0x1c8] sm:$0xff]  ;;  %v124_v7 = vld [vmem:[#allocation5 + $0x1d8] sm:$0xff]  ;;  %v121_v8 = vld [vmem:[#allocation5 + $0x1c0] sm:$0xff] }
  0x10   :  { %222 = vmatprep.subr.mxu1 %v128_v3  ;;  %152 = vmatpush1.msra.mxu0 %v125_v4  ;;  %v123_v9 = vld [vmem:[#allocation5 + $0x1d0] sm:$0xff]  ;;  %v118_v10 = vld [vmem:[#allocation5 + $0x1a8] sm:$0xff]  ;;  %v120_v11 = vld [vmem:[#allocation5 + $0x1b8] sm:$0xff] }
  0x11   :  { %223 = vmatpush1.msra.mxu1 %v127_v5  ;;  %153 = vmatprep.subr.mxu0 %v122_v6  ;;  %v117_v12 = vld [vmem:[#allocation5 + $0x1a0] sm:$0xff]  ;;  %v119_v13 = vld [vmem:[#allocation5 + $0x1b0] sm:$0xff]  ;;  %v114_v14 = vld [vmem:[#allocation5 + $0x188] sm:$0xff] }
  0x12   :  { %224 = vmatprep.subr.mxu1 %v124_v7  ;;  %154 = vmatpush1.msra.mxu0 %v121_v8  ;;  %v116_v15 = vld [vmem:[#allocation5 + $0x198] sm:$0xff]  ;;  %v113_v16 = vld [vmem:[#allocation5 + $0x180] sm:$0xff]  ;;  %v115_v17 = vld [vmem:[#allocation5 + $0x190] sm:$0xff] }
  0x13   :  { %225 = vmatpush1.msra.mxu1 %v123_v9  ;;  %155 = vmatprep.subr.mxu0 %v118_v10  ;;  %v110_v18 = vld [vmem:[#allocation5 + $0x168] sm:$0xff]  ;;  %v112_v19 = vld [vmem:[#allocation5 + $0x178] sm:$0xff]  ;;  %v109_v20 = vld [vmem:[#allocation5 + $0x160] sm:$0xff] }
  0x14   :  { %226 = vmatprep.subr.mxu1 %v120_v11  ;;  %156 = vmatpush1.msra.mxu0 %v117_v12  ;;  %v111_v21 = vld [vmem:[#allocation5 + $0x170] sm:$0xff]  ;;  %v106_v22 = vld [vmem:[#allocation5 + $0x148] sm:$0xff]  ;;  %v108_v23 = vld [vmem:[#allocation5 + $0x158] sm:$0xff] }
  0x15   :  { %227 = vmatpush1.msra.mxu1 %v119_v13  ;;  %157 = vmatprep.subr.mxu0 %v114_v14  ;;  %v105_v24 = vld [vmem:[#allocation5 + $0x140] sm:$0xff]  ;;  %v107_v25 = vld [vmem:[#allocation5 + $0x150] sm:$0xff]  ;;  %v102_v26 = vld [vmem:[#allocation5 + $0x128] sm:$0xff] }
  0x16   :  { %228 = vmatprep.subr.mxu1 %v116_v15  ;;  %158 = vmatpush1.msra.mxu0 %v113_v16  ;;  %v104_v27 = vld [vmem:[#allocation5 + $0x138] sm:$0xff]  ;;  %v101_v28 = vld [vmem:[#allocation5 + $0x120] sm:$0xff]  ;;  %v103_v29 = vld [vmem:[#allocation5 + $0x130] sm:$0xff] }
  0x17   :  { %229 = vmatpush1.msra.mxu1 %v115_v17  ;;  %159 = vmatprep.subr.mxu0 %v110_v18  ;;  %v98_v30 = vld [vmem:[#allocation5 + $0x108] sm:$0xff]  ;;  %v100_v31 = vld [vmem:[#allocation5 + $0x118] sm:$0xff]  ;;  %v97_v32 = vld [vmem:[#allocation5 + $0x100] sm:$0xff] }
  0x18   :  { %230 = vmatprep.subr.mxu1 %v112_v19  ;;  %160 = vmatpush1.msra.mxu0 %v109_v20  ;;  %v99_v33 = vld [vmem:[#allocation5 + $0x110] sm:$0xff]  ;;  %v94_v34 = vld [vmem:[#allocation5 + $0xe8] sm:$0xff]  ;;  %v96_v35 = vld [vmem:[#allocation5 + $0xf8] sm:$0xff] }
  0x19   :  { %231 = vmatpush1.msra.mxu1 %v111_v21  ;;  %161 = vmatprep.subr.mxu0 %v106_v22  ;;  %v93_v36 = vld [vmem:[#allocation5 + $0xe0] sm:$0xff]  ;;  %v95_v37 = vld [vmem:[#allocation5 + $0xf0] sm:$0xff]  ;;  %v90_v38 = vld [vmem:[#allocation5 + $0xc8] sm:$0xff] }
  0x1a   :  { %232 = vmatprep.subr.mxu1 %v108_v23  ;;  %162 = vmatpush1.msra.mxu0 %v105_v24  ;;  %v53_v39 = vld [vmem:[%s1088_s0] sm:$0xff]  ;;  %v89_v41 = vld [vmem:[#allocation5 + $0xc0] sm:$0xff]  ;;  %v91_v42 = vld [vmem:[#allocation5 + $0xd0] sm:$0xff] }
  0x1b   :  { %233 = vmatpush1.msra.mxu1 %v107_v25  ;;  %163 = vmatprep.subr.mxu0 %v102_v26  ;;  %v92_v40 = vld [vmem:[#allocation5 + $0xd8] sm:$0xff]  ;;  %55 = vst.msk [vmem:[#allocation4] sm:$0xff] %vm54_vm0, %v53_v39  ;;  %v86_v43 = vld [vmem:[#allocation5 + $0xa8] sm:$0xff]  ;;  %v85_v45 = vld [vmem:[#allocation5 + $0xa0] sm:$0xff] }
  0x1c   :  { %234 = vmatprep.subr.mxu1 %v104_v27  ;;  %164 = vmatpush1.msra.mxu0 %v101_v28  ;;  %v88_v44 = vld [vmem:[#allocation5 + $0xb8] sm:$0xff]  ;;  %v87_v46 = vld [vmem:[#allocation5 + $0xb0] sm:$0xff]  ;;  %v82_v47 = vld [vmem:[#allocation5 + $0x88] sm:$0xff] }
  0x1d   :  { %235 = vmatpush1.msra.mxu1 %v103_v29  ;;  %165 = vmatprep.subr.mxu0 %v98_v30  ;;  %v84_v48 = vld [vmem:[#allocation5 + $0x98] sm:$0xff]  ;;  %v81_v49 = vld [vmem:[#allocation5 + $0x80] sm:$0xff]  ;;  %v83_v50 = vld [vmem:[#allocation5 + $0x90] sm:$0xff] }
  0x1e   :  { %236 = vmatprep.subr.mxu1 %v100_v31  ;;  %166 = vmatpush1.msra.mxu0 %v97_v32  ;;  %v78_v51 = vld [vmem:[#allocation5 + $0x68] sm:$0xff]  ;;  %v80_v52 = vld [vmem:[#allocation5 + $0x78] sm:$0xff]  ;;  %v77_v53 = vld [vmem:[#allocation5 + $0x60] sm:$0xff] }
  0x1f   :  { %237 = vmatpush1.msra.mxu1 %v99_v33  ;;  %167 = vmatprep.subr.mxu0 %v94_v34  ;;  %v79_v54 = vld [vmem:[#allocation5 + $0x70] sm:$0xff]  ;;  %v74_v55 = vld [vmem:[#allocation5 + $0x48] sm:$0xff]  ;;  %v76_v56 = vld [vmem:[#allocation5 + $0x58] sm:$0xff] }
  0x20   :  { %238 = vmatprep.subr.mxu1 %v96_v35  ;;  %168 = vmatpush1.msra.mxu0 %v93_v36  ;;  %v73_v57 = vld [vmem:[#allocation5 + $0x40] sm:$0xff]  ;;  %v75_v58 = vld [vmem:[#allocation5 + $0x50] sm:$0xff]  ;;  %v70_v59 = vld [vmem:[#allocation5 + $0x28] sm:$0xff] }
  0x21   :  { %239 = vmatpush1.msra.mxu1 %v95_v37  ;;  %169 = vmatprep.subr.mxu0 %v90_v38  ;;  %v72_v60 = vld [vmem:[#allocation5 + $0x38] sm:$0xff]  ;;  %v69_v61 = vld [vmem:[#allocation5 + $0x20] sm:$0xff]  ;;  %v71_v62 = vld [vmem:[#allocation5 + $0x30] sm:$0xff] }
  0x22   :  { %240 = vmatprep.subr.mxu1 %v92_v40  ;;  %170 = vmatpush1.msra.mxu0 %v89_v41  ;;  %v66_v63 = vld [vmem:[#allocation5 + $0x8] sm:$0xff]  ;;  %v68_v1 = vld [vmem:[#allocation5 + $0x18] sm:$0xff]  ;;  %v65_v2 = vld [vmem:[#allocation5] sm:$0xff] }
  0x23   :  { %241 = vmatpush1.msra.mxu1 %v91_v42  ;;  %171 = vmatprep.subr.mxu0 %v86_v43  ;;  %v67_v3 = vld [vmem:[#allocation5 + $0x10] sm:$0xff]  ;;  %v42_v4 = vld [vmem:[%s1089_s1 + $0x8] sm:$0xff]  ;;  %v394_v7 = vld [vmem:[#allocation5 + $0x3e8] sm:$0xff] }
  0x24   :  { %242 = vmatprep.subr.mxu1 %v88_v44  ;;  %172 = vmatpush1.msra.mxu0 %v85_v45  ;;  %v396_v8 = vld [vmem:[#allocation5 + $0x3f8] sm:$0xff]  ;;  %v393_v9 = vld [vmem:[#allocation5 + $0x3e0] sm:$0xff]  ;;  %v395_v10 = vld [vmem:[#allocation5 + $0x3f0] sm:$0xff] }
  0x25   :  { %243 = vmatpush1.msra.mxu1 %v87_v46  ;;  %173 = vmatprep.subr.mxu0 %v82_v47  ;;  %v390_v11 = vld [vmem:[#allocation5 + $0x3c8] sm:$0xff]  ;;  %v392_v12 = vld [vmem:[#allocation5 + $0x3d8] sm:$0xff]  ;;  %v389_v13 = vld [vmem:[#allocation5 + $0x3c0] sm:$0xff] }
  0x26   :  { %244 = vmatprep.subr.mxu1 %v84_v48  ;;  %174 = vmatpush1.msra.mxu0 %v81_v49  ;;  %v391_v14 = vld [vmem:[#allocation5 + $0x3d0] sm:$0xff]  ;;  %v386_v15 = vld [vmem:[#allocation5 + $0x3a8] sm:$0xff]  ;;  %v388_v16 = vld [vmem:[#allocation5 + $0x3b8] sm:$0xff] }
  0x27   :  { %245 = vmatpush1.msra.mxu1 %v83_v50  ;;  %175 = vmatprep.subr.mxu0 %v78_v51  ;;  %v385_v17 = vld [vmem:[#allocation5 + $0x3a0] sm:$0xff]  ;;  %v387_v18 = vld [vmem:[#allocation5 + $0x3b0] sm:$0xff]  ;;  %v382_v19 = vld [vmem:[#allocation5 + $0x388] sm:$0xff] }
  0x28   :  { %246 = vmatprep.subr.mxu1 %v80_v52  ;;  %176 = vmatpush1.msra.mxu0 %v77_v53  ;;  %v384_v20 = vld [vmem:[#allocation5 + $0x398] sm:$0xff]  ;;  %v381_v21 = vld [vmem:[#allocation5 + $0x380] sm:$0xff]  ;;  %v383_v22 = vld [vmem:[#allocation5 + $0x390] sm:$0xff] }
  0x29   :  { %247 = vmatpush1.msra.mxu1 %v79_v54  ;;  %177 = vmatprep.subr.mxu0 %v74_v55  ;;  %v378_v23 = vld [vmem:[#allocation5 + $0x368] sm:$0xff]  ;;  %v380_v24 = vld [vmem:[#allocation5 + $0x378] sm:$0xff]  ;;  %v377_v25 = vld [vmem:[#allocation5 + $0x360] sm:$0xff] }
  0x2a   :  { %248 = vmatprep.subr.mxu1 %v76_v56  ;;  %178 = vmatpush1.msra.mxu0 %v73_v57  ;;  %v379_v26 = vld [vmem:[#allocation5 + $0x370] sm:$0xff]  ;;  %v374_v27 = vld [vmem:[#allocation5 + $0x348] sm:$0xff]  ;;  %v376_v28 = vld [vmem:[#allocation5 + $0x358] sm:$0xff] }
  0x2b   :  { %249 = vmatpush1.msra.mxu1 %v75_v58  ;;  %179 = vmatprep.subr.mxu0 %v70_v59  ;;  %v373_v29 = vld [vmem:[#allocation5 + $0x340] sm:$0xff]  ;;  %v375_v30 = vld [vmem:[#allocation5 + $0x350] sm:$0xff]  ;;  %v370_v31 = vld [vmem:[#allocation5 + $0x328] sm:$0xff] }
  0x2c   :  { %250 = vmatprep.subr.mxu1 %v72_v60  ;;  %180 = vmatpush1.msra.mxu0 %v69_v61  ;;  %v372_v32 = vld [vmem:[#allocation5 + $0x338] sm:$0xff]  ;;  %v369_v33 = vld [vmem:[#allocation5 + $0x320] sm:$0xff]  ;;  %v371_v34 = vld [vmem:[#allocation5 + $0x330] sm:$0xff] }
  0x2d   :  { %251 = vmatpush1.msra.mxu1 %v71_v62  ;;  %181 = vmatprep.subr.mxu0 %v66_v63  ;;  %v366_v35 = vld [vmem:[#allocation5 + $0x308] sm:$0xff]  ;;  %v368_v36 = vld [vmem:[#allocation5 + $0x318] sm:$0xff]  ;;  %v365_v37 = vld [vmem:[#allocation5 + $0x300] sm:$0xff] }
  0x2e   :  { %252 = vmatprep.subr.mxu1 %v68_v1  ;;  %182 = vmatpush1.msra.mxu0 %v65_v2  ;;  %v367_v38 = vld [vmem:[#allocation5 + $0x310] sm:$0xff]  ;;  %v362_v39 = vld [vmem:[#allocation5 + $0x2e8] sm:$0xff]  ;;  %v364_v40 = vld [vmem:[#allocation5 + $0x2f8] sm:$0xff] }
  0x2f   :  { %253 = vmatpush1.msra.mxu1 %v67_v3  ;;  %325 = vrot.lane.b32.xlu0 %v42_v4, %s963_s25  ;;  %v361_v41 = vld [vmem:[#allocation5 + $0x2e0] sm:$0xff]  ;;  %v363_v42 = vld [vmem:[#allocation5 + $0x2f0] sm:$0xff]  ;;  %v358_v43 = vld [vmem:[#allocation5 + $0x2c8] sm:$0xff] }
  0x30   :  { %420 = vmatprep.subr.mxu0 %v394_v7  ;;  %491 = vmatprep.subr.mxu1 %v396_v8  ;;  %v360_v44 = vld [vmem:[#allocation5 + $0x2d8] sm:$0xff]  ;;  %v357_v45 = vld [vmem:[#allocation5 + $0x2c0] sm:$0xff]  ;;  %v359_v46 = vld [vmem:[#allocation5 + $0x2d0] sm:$0xff] }
  0x31   :  { %v354_v47 = vld [vmem:[#allocation5 + $0x2a8] sm:$0xff]  ;;  %v356_v48 = vld [vmem:[#allocation5 + $0x2b8] sm:$0xff]  ;;  %v353_v49 = vld [vmem:[#allocation5 + $0x2a0] sm:$0xff] }
  0x32   :  { %v355_v50 = vld [vmem:[#allocation5 + $0x2b0] sm:$0xff]  ;;  %v350_v51 = vld [vmem:[#allocation5 + $0x288] sm:$0xff]  ;;  %v352_v52 = vld [vmem:[#allocation5 + $0x298] sm:$0xff] }
  0x33   :  { %v349_v53 = vld [vmem:[#allocation5 + $0x280] sm:$0xff]  ;;  %v351_v54 = vld [vmem:[#allocation5 + $0x290] sm:$0xff]  ;;  %v346_v55 = vld [vmem:[#allocation5 + $0x268] sm:$0xff] }
  0x34   :  { %v348_v56 = vld [vmem:[#allocation5 + $0x278] sm:$0xff]  ;;  %v345_v57 = vld [vmem:[#allocation5 + $0x260] sm:$0xff]  ;;  %v347_v58 = vld [vmem:[#allocation5 + $0x270] sm:$0xff] }
  0x35   :  { %v342_v59 = vld [vmem:[#allocation5 + $0x248] sm:$0xff]  ;;  %v344_v60 = vld [vmem:[#allocation5 + $0x258] sm:$0xff]  ;;  %v341_v61 = vld [vmem:[#allocation5 + $0x240] sm:$0xff] }
  0x36   :  { %v343_v62 = vld [vmem:[#allocation5 + $0x250] sm:$0xff]  ;;  %v338_v63 = vld [vmem:[#allocation5 + $0x228] sm:$0xff]  ;;  %v340_v1 = vld [vmem:[#allocation5 + $0x238] sm:$0xff] }
  0x37   :  { %v337_v2 = vld [vmem:[#allocation5 + $0x220] sm:$0xff]  ;;  %v339_v3 = vld [vmem:[#allocation5 + $0x230] sm:$0xff]  ;;  %v334_v4 = vld [vmem:[#allocation5 + $0x208] sm:$0xff] }
  0x38   :  { %v335_v7 = vld [vmem:[#allocation5 + $0x210] sm:$0xff]  ;;  %v43_v8 = vld [vmem:[%s1089_s1 + $0x10] sm:$0xff] }
  0x39   :  { %596 = vrot.lane.b32.xlu1 %v43_v8, %s963_s25  ;;  %v646_v8 = vld [vmem:[#allocation5 + $0x550] sm:$0xff] }
  0x81   :  { %v59_v5 = vpop.permute.xlu0 %58 }
  0x82   :  { %62 = vst.msk [vmem:[#allocation4] sm:$0xff] %vm61_vm1, %v59_v5  ;;  %v336_v5 = vld [vmem:[#allocation5 + $0x218] sm:$0xff] }
  0x89   :  { %v64_v6 = vld [vmem:[#allocation4] sm:$0xff] }
  0x8a   :  { %216 = vmatmul.mubr.f32.vlgmr.msra.gmra.mxu0 %v64_v6  ;;  %287 = vmatmul.mubr.f32.vlgmr.msra.gmra.mxu1 %v64_v6  ;;  %v333_v6 = vld [vmem:[#allocation5 + $0x200] sm:$0xff] }
  0x8b   :  { %484 = vmatprep.mubr.f32.mxu0 %v964_v0  ;;  %555 = vmatprep.mubr.f32.mxu1 %v964_v0 }
  0x8c   :  { %421 = vmatpush1.msra.mxu0 %v393_v9  ;;  %492 = vmatpush1.msra.mxu1 %v395_v10  ;;  %v131_v9 = vlaneseq }
  0x8d   :  { %422 = vmatprep.subr.mxu0 %v390_v11  ;;  %493 = vmatprep.subr.mxu1 %v392_v12  ;;  %v129_v12 = vld [vmem:[%s1092_s4] sm:$0xf] }
  0x8e   :  { %423 = vmatpush1.msra.mxu0 %v389_v13  ;;  %494 = vmatpush1.msra.mxu1 %v391_v14  ;;  %v132_v10 = vshrl.u32 %v131_v9, 7  ;;  %v641_v9 = vld [vmem:[#allocation5 + $0x528] sm:$0xff] }
  0x8f   :  { %424 = vmatprep.subr.mxu0 %v386_v15  ;;  %495 = vmatprep.subr.mxu1 %v388_v16 }
  0x90   :  { %425 = vmatpush1.msra.mxu0 %v385_v17  ;;  %496 = vmatpush1.msra.mxu1 %v387_v18  ;;  %v1026_v11 = vsub.s32 0, %v132_v10  ;;  %v1031_v13 = vsub.s32 1, %v132_v10 }
  0x91   :  { %426 = vmatprep.subr.mxu0 %v382_v19  ;;  %497 = vmatprep.subr.mxu1 %v384_v20 }
  0x92   :  { %427 = vmatpush1.msra.mxu0 %v381_v21  ;;  %498 = vmatpush1.msra.mxu1 %v383_v22  ;;  %v134_v14 = vrot.slane %v129_v12, %v1026_v11  ;;  %v138_v15 = vrot.slane %v129_v12, %v1031_v13  ;;  %v1035_v21 = vsub.s32 3, %v132_v10 }
  0x93   :  { %428 = vmatprep.subr.mxu0 %v378_v23  ;;  %499 = vmatprep.subr.mxu1 %v380_v24 }
  0x94   :  { %429 = vmatpush1.msra.mxu0 %v377_v25  ;;  %500 = vmatpush1.msra.mxu1 %v379_v26  ;;  %v146_v24 = vrot.slane %v129_v12, %v1035_v21  ;;  %v1038_v26 = vsub.s32 2, %v132_v10  ;;  %v643_v10 = vld [vmem:[#allocation5 + $0x538] sm:$0xff] }
  0x95   :  { %430 = vmatprep.subr.mxu0 %v374_v27  ;;  %501 = vmatprep.subr.mxu1 %v376_v28 }
  0x96   :  { %431 = vmatpush1.msra.mxu0 %v373_v29  ;;  %502 = vmatpush1.msra.mxu1 %v375_v30  ;;  %v142_v28 = vrot.slane %v129_v12, %v1038_v26  ;;  %v640_v12 = vld [vmem:[#allocation5 + $0x520] sm:$0xff] }
  0x97   :  { %432 = vmatprep.subr.mxu0 %v370_v31  ;;  %503 = vmatprep.subr.mxu1 %v372_v32 }
  0x98   :  { %433 = vmatpush1.msra.mxu0 %v369_v33  ;;  %504 = vmatpush1.msra.mxu1 %v371_v34 }
  0x99   :  { %434 = vmatprep.subr.mxu0 %v366_v35  ;;  %505 = vmatprep.subr.mxu1 %v368_v36 }
  0x9a   :  { %435 = vmatpush1.msra.mxu0 %v365_v37  ;;  %506 = vmatpush1.msra.mxu1 %v367_v38  ;;  %v47_v37 = vld [vmem:[%s1090_s2] sm:$0xff] }
  0x9b   :  { %436 = vmatprep.subr.mxu0 %v362_v39  ;;  %507 = vmatprep.subr.mxu1 %v364_v40 }
  0x9c   :  { %437 = vmatpush1.msra.mxu0 %v361_v41  ;;  %508 = vmatpush1.msra.mxu1 %v363_v42 }
  0x9d   :  { %438 = vmatprep.subr.mxu0 %v358_v43  ;;  %509 = vmatprep.subr.mxu1 %v360_v44 }
  0x9e   :  { %439 = vmatpush1.msra.mxu0 %v357_v45  ;;  %510 = vmatpush1.msra.mxu1 %v359_v46 }
  0x9f   :  { %440 = vmatprep.subr.mxu0 %v354_v47  ;;  %511 = vmatprep.subr.mxu1 %v356_v48 }
  0xa0   :  { %441 = vmatpush1.msra.mxu0 %v353_v49  ;;  %512 = vmatpush1.msra.mxu1 %v355_v50  ;;  %v665_v49 = vld [vmem:[#allocation5 + $0x5e8] sm:$0xff]  ;;  %v667_v50 = vld [vmem:[#allocation5 + $0x5f8] sm:$0xff] }
  0xa1   :  { %442 = vmatprep.subr.mxu0 %v350_v51  ;;  %513 = vmatprep.subr.mxu1 %v352_v52  ;;  %v326_v47 = vpop.permute.xlu0 %325  ;;  %v664_v51 = vld [vmem:[#allocation5 + $0x5e0] sm:$0xff]  ;;  %v666_v52 = vld [vmem:[#allocation5 + $0x5f0] sm:$0xff] }
  0xa2   :  { %443 = vmatpush1.msra.mxu0 %v349_v53  ;;  %514 = vmatpush1.msra.mxu1 %v351_v54  ;;  %v661_v53 = vld [vmem:[#allocation5 + $0x5c8] sm:$0xff]  ;;  %v663_v54 = vld [vmem:[#allocation5 + $0x5d8] sm:$0xff] }
  0xa3   :  { %444 = vmatprep.subr.mxu0 %v346_v55  ;;  %515 = vmatprep.subr.mxu1 %v348_v56  ;;  %v660_v55 = vld [vmem:[#allocation5 + $0x5c0] sm:$0xff]  ;;  %v662_v56 = vld [vmem:[#allocation5 + $0x5d0] sm:$0xff] }
  0xa4   :  { %445 = vmatpush1.msra.mxu0 %v345_v57  ;;  %516 = vmatpush1.msra.mxu1 %v347_v58  ;;  %v657_v57 = vld [vmem:[#allocation5 + $0x5a8] sm:$0xff]  ;;  %v659_v58 = vld [vmem:[#allocation5 + $0x5b8] sm:$0xff] }
  0xa5   :  { %446 = vmatprep.subr.mxu0 %v342_v59  ;;  %517 = vmatprep.subr.mxu1 %v344_v60  ;;  %v658_v59 = vld [vmem:[#allocation5 + $0x5b0] sm:$0xff]  ;;  %v653_v60 = vld [vmem:[#allocation5 + $0x588] sm:$0xff] }
  0xa6   :  { %447 = vmatpush1.msra.mxu0 %v341_v61  ;;  %518 = vmatpush1.msra.mxu1 %v343_v62  ;;  %v655_v61 = vld [vmem:[#allocation5 + $0x598] sm:$0xff]  ;;  %v652_v62 = vld [vmem:[#allocation5 + $0x580] sm:$0xff] }
  0xa7   :  { %448 = vmatprep.subr.mxu0 %v338_v63  ;;  %519 = vmatprep.subr.mxu1 %v340_v1  ;;  %v654_v63 = vld [vmem:[#allocation5 + $0x590] sm:$0xff]  ;;  %v649_v1 = vld [vmem:[#allocation5 + $0x568] sm:$0xff] }
  0xa8   :  { %449 = vmatpush1.msra.mxu0 %v337_v2  ;;  %520 = vmatpush1.msra.mxu1 %v339_v3  ;;  %v651_v2 = vld [vmem:[#allocation5 + $0x578] sm:$0xff]  ;;  %v648_v3 = vld [vmem:[#allocation5 + $0x560] sm:$0xff] }
  0xa9   :  { %450 = vmatprep.subr.mxu0 %v334_v4  ;;  %521 = vmatprep.subr.mxu1 %v336_v5  ;;  %v650_v4 = vld [vmem:[#allocation5 + $0x570] sm:$0xff]  ;;  %v645_v5 = vld [vmem:[#allocation5 + $0x548] sm:$0xff] }
  0xaa   :  { %451 = vmatpush1.msra.mxu0 %v333_v6  ;;  %522 = vmatpush1.msra.mxu1 %v335_v7  ;;  %v647_v6 = vld [vmem:[#allocation5 + $0x558] sm:$0xff]  ;;  %v644_v7 = vld [vmem:[#allocation5 + $0x540] sm:$0xff] }
  0xab   :  { %691 = vmatprep.subr.mxu0 %v665_v49  ;;  %762 = vmatprep.subr.mxu1 %v667_v50  ;;  %v605_v49 = vld [vmem:[#allocation5 + $0x408] sm:$0xff]  ;;  %v607_v50 = vld [vmem:[#allocation5 + $0x418] sm:$0xff] }
 0x14a   :  { %v217_v16 = vpop.f32.mrf.mxu0  ;;  %v288_v22 = vpop.f32.mrf.mxu1 }
 0x14b   :  { %v218_v17 = vadd.f32 %v217_v16, %v134_v14  ;;  %v289_v31 = vadd.f32 %v288_v22, %v142_v28  ;;  %v642_v14 = vld [vmem:[#allocation5 + $0x530] sm:$0xff]  ;;  %v639_v16 = vld [vmem:[#allocation5 + $0x518] sm:$0xff]  ;;  %v632_v22 = vld [vmem:[#allocation5 + $0x4e0] sm:$0xff] }
 0x14c   :  { %v219_v18 = vpop.f32.mrf.mxu0  ;;  %v290_v25 = vpop.f32.mrf.mxu1  ;;  %v630_v28 = vld [vmem:[#allocation5 + $0x4d0] sm:$0xff] }
 0x14d   :  { %v872_v19 = vmul.f32 -1.442695, %v218_v17  ;;  %v220_v20 = vadd.f32 %v219_v18, %v138_v15  ;;  %v291_v27 = vadd.f32 %v290_v25, %v146_v24  ;;  %v637_v15 = vld [vmem:[#allocation5 + $0x508] sm:$0xff]  ;;  %v636_v17 = vld [vmem:[#allocation5 + $0x500] sm:$0xff]  ;;  %v638_v18 = vld [vmem:[#allocation5 + $0x510] sm:$0xff] }
 0x14e   :  { %v629_v24 = vld [vmem:[#allocation5 + $0x4c8] sm:$0xff]  ;;  %v631_v25 = vld [vmem:[#allocation5 + $0x4d8] sm:$0xff] }
 0x14f   :  { %891 = vpow2.f32 %v872_v19  ;;  %v873_v23 = vmul.f32 -1.442695, %v220_v20  ;;  %v874_v29 = vmul.f32 -1.442695, %v291_v27  ;;  %v633_v19 = vld [vmem:[#allocation5 + $0x4e8] sm:$0xff]  ;;  %v635_v20 = vld [vmem:[#allocation5 + $0x4f8] sm:$0xff] }
 0x150   :  { %v628_v27 = vld [vmem:[#allocation5 + $0x4c0] sm:$0xff] }
 0x151   :  { %893 = vpow2.f32 %v873_v23  ;;  %v634_v23 = vld [vmem:[#allocation5 + $0x4f0] sm:$0xff] }
 0x152   :  { %895 = vpow2.f32 %v874_v29  ;;  %v625_v29 = vld [vmem:[#allocation5 + $0x4a8] sm:$0xff] }
 0x15c   :  { %v892_v30 = vpop.eup %891 }
 0x15d   :  { %v296_v32 = vadd.f32 1.0, %v892_v30  ;;  %v627_v30 = vld [vmem:[#allocation5 + $0x4b8] sm:$0xff] }
 0x15e   :  { %v894_v33 = vpop.eup %893 }
 0x15f   :  { %897 = vrcp.f32 %v296_v32  ;;  %v302_v34 = vadd.f32 1.0, %v894_v33  ;;  %v896_v35 = vpop.eup %895  ;;  %v626_v32 = vld [vmem:[#allocation5 + $0x4b0] sm:$0xff]  ;;  %v621_v33 = vld [vmem:[#allocation5 + $0x488] sm:$0xff] }
 0x160   :  { %899 = vtanh.f32 %v289_v31  ;;  %v309_v40 = vadd.f32 1.0, %v896_v35  ;;  %v624_v31 = vld [vmem:[#allocation5 + $0x4a0] sm:$0xff] }
 0x161   :  { %901 = vrcp.f32 %v302_v34  ;;  %v623_v34 = vld [vmem:[#allocation5 + $0x498] sm:$0xff]  ;;  %v620_v35 = vld [vmem:[#allocation5 + $0x480] sm:$0xff] }
 0x162   :  { %903 = vrcp.f32 %v309_v40  ;;  %v618_v40 = vld [vmem:[#allocation5 + $0x470] sm:$0xff] }
 0x16c   :  { %v898_v36 = vpop.eup %897 }
 0x16d   :  { %v900_v38 = vpop.eup %899 }
 0x16e   :  { %v902_v39 = vpop.eup %901  ;;  %v313_v41 = vmul.f32 %v900_v38, %v898_v36  ;;  %v622_v36 = vld [vmem:[#allocation5 + $0x490] sm:$0xff]  ;;  %v619_v38 = vld [vmem:[#allocation5 + $0x478] sm:$0xff] }
 0x16f   :  { %v312_v42 = vmul.f32 %v902_v39, %v47_v37  ;;  %v904_v44 = vpop.eup %903  ;;  %v617_v37 = vld [vmem:[#allocation5 + $0x468] sm:$0xff]  ;;  %v616_v39 = vld [vmem:[#allocation5 + $0x460] sm:$0xff] }
 0x171   :  { %v314_v43 = vadd.f32 %v313_v41, %v312_v42  ;;  %v613_v41 = vld [vmem:[#allocation5 + $0x448] sm:$0xff]  ;;  %v615_v42 = vld [vmem:[#allocation5 + $0x458] sm:$0xff] }
 0x173   :  { %905 = vtanh.f32 %v314_v43  ;;  %320 = vst [vmem:[%s1094_s6] sm:$0xff] %v314_v43  ;;  %v612_v43 = vld [vmem:[#allocation5 + $0x440] sm:$0xff] }
 0x180   :  { %v906_v45 = vpop.eup %905 }
 0x181   :  { %v316_v46 = vmul.f32 %v906_v45, %v904_v44  ;;  %v614_v44 = vld [vmem:[#allocation5 + $0x450] sm:$0xff]  ;;  %v609_v45 = vld [vmem:[#allocation5 + $0x428] sm:$0xff] }
 0x183   :  { %319 = vst [vmem:[%s1093_s5] sm:$0xff] %v316_v46  ;;  %321 = vst.msk [vmem:[#allocation4] sm:$0xff] %vm54_vm0, %v316_v46  ;;  %v611_v46 = vld [vmem:[#allocation5 + $0x438] sm:$0xff] }
 0x184   :  { %328 = vst.msk [vmem:[#allocation4] sm:$0xff] %vm61_vm1, %v326_v47  ;;  %v608_v47 = vld [vmem:[#allocation5 + $0x420] sm:$0xff] }
 0x18b   :  { %v331_v48 = vld [vmem:[#allocation4] sm:$0xff] }
 0x18c   :  { %485 = vmatmul.mubr.f32.vlgmr.msra.gmra.mxu0 %v331_v48  ;;  %556 = vmatmul.mubr.f32.vlgmr.msra.gmra.mxu1 %v331_v48  ;;  %v610_v48 = vld [vmem:[#allocation5 + $0x430] sm:$0xff] }
 0x18d   :  { %755 = vmatprep.mubr.f32.mxu0 %v964_v0  ;;  %826 = vmatprep.mubr.f32.mxu1 %v964_v0  ;;  %v656_v0 = vld [vmem:[#allocation5 + $0x5a0] sm:$0xff] }
 0x18e   :  { %692 = vmatpush1.msra.mxu0 %v664_v51  ;;  %763 = vmatpush1.msra.mxu1 %v666_v52  ;;  %v604_v51 = vld [vmem:[#allocation5 + $0x400] sm:$0xff]  ;;  %v606_v52 = vld [vmem:[#allocation5 + $0x410] sm:$0xff] }
 0x18f   :  { %693 = vmatprep.subr.mxu0 %v661_v53  ;;  %764 = vmatprep.subr.mxu1 %v663_v54  ;;  %v875_v53 = vld [vmem:[%s1092_s4 + $0x4] sm:$0xf] }
 0x190   :  { %694 = vmatpush1.msra.mxu0 %v660_v55  ;;  %765 = vmatpush1.msra.mxu1 %v662_v56  ;;  %v403_v54 = vrot.slane %v875_v53, %v1026_v11  ;;  %v407_v55 = vrot.slane %v875_v53, %v1031_v13 }
 0x191   :  { %695 = vmatprep.subr.mxu0 %v657_v57  ;;  %766 = vmatprep.subr.mxu1 %v659_v58 }
 0x192   :  { %696 = vmatpush1.msra.mxu0 %v656_v0  ;;  %767 = vmatpush1.msra.mxu1 %v658_v59 }
 0x193   :  { %697 = vmatprep.subr.mxu0 %v653_v60  ;;  %768 = vmatprep.subr.mxu1 %v655_v61 }
 0x194   :  { %698 = vmatpush1.msra.mxu0 %v652_v62  ;;  %769 = vmatpush1.msra.mxu1 %v654_v63  ;;  %v415_v62 = vrot.slane %v875_v53, %v1035_v21 }
 0x195   :  { %699 = vmatprep.subr.mxu0 %v649_v1  ;;  %770 = vmatprep.subr.mxu1 %v651_v2  ;;  %v411_v2 = vrot.slane %v875_v53, %v1038_v26 }
 0x196   :  { %700 = vmatpush1.msra.mxu0 %v648_v3  ;;  %771 = vmatpush1.msra.mxu1 %v650_v4 }
 0x197   :  { %701 = vmatprep.subr.mxu0 %v645_v5  ;;  %772 = vmatprep.subr.mxu1 %v647_v6 }
 0x198   :  { %702 = vmatpush1.msra.mxu0 %v644_v7  ;;  %773 = vmatpush1.msra.mxu1 %v646_v8 }
 0x199   :  { %703 = vmatprep.subr.mxu0 %v641_v9  ;;  %774 = vmatprep.subr.mxu1 %v643_v10 }
 0x19a   :  { %704 = vmatpush1.msra.mxu0 %v640_v12  ;;  %775 = vmatpush1.msra.mxu1 %v642_v14  ;;  %v48_v12 = vld [vmem:[%s1090_s2 + $0x8] sm:$0xff] }
 0x19b   :  { %705 = vmatprep.subr.mxu0 %v637_v15  ;;  %776 = vmatprep.subr.mxu1 %v639_v16 }
 0x19c   :  { %706 = vmatpush1.msra.mxu0 %v636_v17  ;;  %777 = vmatpush1.msra.mxu1 %v638_v18 }
 0x19d   :  { %707 = vmatprep.subr.mxu0 %v633_v19  ;;  %778 = vmatprep.subr.mxu1 %v635_v20 }
 0x19e   :  { %708 = vmatpush1.msra.mxu0 %v632_v22  ;;  %779 = vmatpush1.msra.mxu1 %v634_v23 }
 0x19f   :  { %709 = vmatprep.subr.mxu0 %v629_v24  ;;  %780 = vmatprep.subr.mxu1 %v631_v25  ;;  %v597_v24 = vpop.permute.xlu1 %596 }
 0x1a0   :  { %710 = vmatpush1.msra.mxu0 %v628_v27  ;;  %781 = vmatpush1.msra.mxu1 %v630_v28  ;;  %v881_v27 = vld [vmem:[%s1092_s4 + $0x8] sm:$0xf] }
 0x1a1   :  { %711 = vmatprep.subr.mxu0 %v625_v29  ;;  %782 = vmatprep.subr.mxu1 %v627_v30  ;;  %v674_v28 = vrot.slane %v881_v27, %v1026_v11  ;;  %v678_v29 = vrot.slane %v881_v27, %v1031_v13 }
 0x1a2   :  { %712 = vmatpush1.msra.mxu0 %v624_v31  ;;  %783 = vmatpush1.msra.mxu1 %v626_v32 }
 0x1a3   :  { %713 = vmatprep.subr.mxu0 %v621_v33  ;;  %784 = vmatprep.subr.mxu1 %v623_v34 }
 0x1a4   :  { %714 = vmatpush1.msra.mxu0 %v620_v35  ;;  %785 = vmatpush1.msra.mxu1 %v622_v36 }
 0x1a5   :  { %715 = vmatprep.subr.mxu0 %v617_v37  ;;  %786 = vmatprep.subr.mxu1 %v619_v38  ;;  %v686_v37 = vrot.slane %v881_v27, %v1035_v21  ;;  %v49_v21 = vld [vmem:[%s1090_s2 + $0x10] sm:$0xff] }
 0x1a6   :  { %716 = vmatpush1.msra.mxu0 %v616_v39  ;;  %787 = vmatpush1.msra.mxu1 %v618_v40  ;;  %v682_v40 = vrot.slane %v881_v27, %v1038_v26 }
 0x1a7   :  { %717 = vmatprep.subr.mxu0 %v613_v41  ;;  %788 = vmatprep.subr.mxu1 %v615_v42 }
 0x1a8   :  { %718 = vmatpush1.msra.mxu0 %v612_v43  ;;  %789 = vmatpush1.msra.mxu1 %v614_v44 }
 0x1a9   :  { %719 = vmatprep.subr.mxu0 %v609_v45  ;;  %790 = vmatprep.subr.mxu1 %v611_v46 }
 0x1aa   :  { %720 = vmatpush1.msra.mxu0 %v608_v47  ;;  %791 = vmatpush1.msra.mxu1 %v610_v48 }
 0x1ab   :  { %721 = vmatprep.subr.mxu0 %v605_v49  ;;  %792 = vmatprep.subr.mxu1 %v607_v50 }
 0x1ac   :  { %722 = vmatpush1.msra.mxu0 %v604_v51  ;;  %793 = vmatpush1.msra.mxu1 %v606_v52 }
 0x24c   :  { %v486_v56 = vpop.f32.mrf.mxu0  ;;  %v557_v60 = vpop.f32.mrf.mxu1 }
 0x24d   :  { %v487_v57 = vadd.f32 %v486_v56, %v403_v54  ;;  %v558_v5 = vadd.f32 %v557_v60, %v411_v2 }
 0x24e   :  { %v488_v58 = vpop.f32.mrf.mxu0  ;;  %v559_v63 = vpop.f32.mrf.mxu1 }
 0x24f   :  { %v876_v0 = vmul.f32 -1.442695, %v487_v57  ;;  %v489_v59 = vadd.f32 %v488_v58, %v407_v55  ;;  %v560_v1 = vadd.f32 %v559_v63, %v415_v62 }
 0x251   :  { %907 = vpow2.f32 %v876_v0  ;;  %v877_v61 = vmul.f32 -1.442695, %v489_v59  ;;  %v878_v3 = vmul.f32 -1.442695, %v560_v1 }
 0x253   :  { %909 = vpow2.f32 %v877_v61 }
 0x254   :  { %911 = vpow2.f32 %v878_v3 }
 0x25e   :  { %v908_v4 = vpop.eup %907 }
 0x25f   :  { %v565_v6 = vadd.f32 1.0, %v908_v4 }
 0x260   :  { %v910_v7 = vpop.eup %909 }
 0x261   :  { %913 = vrcp.f32 %v565_v6  ;;  %v571_v8 = vadd.f32 1.0, %v910_v7  ;;  %v912_v9 = vpop.eup %911 }
 0x262   :  { %915 = vtanh.f32 %v558_v5  ;;  %v578_v16 = vadd.f32 1.0, %v912_v9 }
 0x263   :  { %917 = vrcp.f32 %v571_v8 }
 0x264   :  { %919 = vrcp.f32 %v578_v16 }
 0x26e   :  { %v914_v10 = vpop.eup %913 }
 0x26f   :  { %v916_v14 = vpop.eup %915 }
 0x270   :  { %v918_v15 = vpop.eup %917  ;;  %v582_v17 = vmul.f32 %v916_v14, %v914_v10 }
 0x271   :  { %v581_v18 = vmul.f32 %v918_v15, %v48_v12  ;;  %v920_v20 = vpop.eup %919 }
 0x273   :  { %v583_v19 = vadd.f32 %v582_v17, %v581_v18 }
 0x275   :  { %921 = vtanh.f32 %v583_v19  ;;  %880 = vst [vmem:[%s1094_s6 + $0x8] sm:$0xff] %v583_v19 }
 0x282   :  { %v922_v22 = vpop.eup %921 }
 0x283   :  { %v585_v23 = vmul.f32 %v922_v22, %v920_v20 }
 0x285   :  { %879 = vst [vmem:[%s1093_s5 + $0x8] sm:$0xff] %v585_v23  ;;  %592 = vst.msk [vmem:[#allocation4] sm:$0xff] %vm54_vm0, %v585_v23 }
 0x286   :  { %599 = vst.msk [vmem:[#allocation4] sm:$0xff] %vm61_vm1, %v597_v24 }
 0x28d   :  { %v602_v25 = vld [vmem:[#allocation4] sm:$0xff] }
 0x28e   :  { %756 = vmatmul.mubr.f32.vlgmr.msra.gmra.mxu0 %v602_v25  ;;  %827 = vmatmul.mubr.f32.vlgmr.msra.gmra.mxu1 %v602_v25 }
 0x34e   :  { %v757_v30 = vpop.f32.mrf.mxu0  ;;  %v828_v35 = vpop.f32.mrf.mxu1 }
 0x34f   :  { %v758_v31 = vadd.f32 %v757_v30, %v674_v28  ;;  %v829_v11 = vadd.f32 %v828_v35, %v682_v40 }
 0x350   :  { %v759_v32 = vpop.f32.mrf.mxu0  ;;  %v830_v38 = vpop.f32.mrf.mxu1 }
 0x351   :  { %v882_v33 = vmul.f32 -1.442695, %v758_v31  ;;  %v760_v34 = vadd.f32 %v759_v32, %v678_v29  ;;  %v831_v39 = vadd.f32 %v830_v38, %v686_v37 }
 0x353   :  { %923 = vpow2.f32 %v882_v33  ;;  %v883_v36 = vmul.f32 -1.442695, %v760_v34  ;;  %v884_v41 = vmul.f32 -1.442695, %v831_v39 }
 0x355   :  { %925 = vpow2.f32 %v883_v36 }
 0x356   :  { %927 = vpow2.f32 %v884_v41 }
 0x360   :  { %v924_v42 = vpop.eup %923 }
 0x361   :  { %v836_v43 = vadd.f32 1.0, %v924_v42 }
 0x362   :  { %v926_v13 = vpop.eup %925 }
 0x363   :  { %929 = vrcp.f32 %v836_v43  ;;  %v842_v44 = vadd.f32 1.0, %v926_v13  ;;  %v928_v45 = vpop.eup %927 }
 0x364   :  { %931 = vtanh.f32 %v829_v11  ;;  %v849_v49 = vadd.f32 1.0, %v928_v45 }
 0x365   :  { %933 = vrcp.f32 %v842_v44 }
 0x366   :  { %935 = vrcp.f32 %v849_v49 }
 0x370   :  { %v930_v46 = vpop.eup %929 }
 0x371   :  { %v932_v47 = vpop.eup %931 }
 0x372   :  { %v934_v48 = vpop.eup %933  ;;  %v853_v26 = vmul.f32 %v932_v47, %v930_v46 }
 0x373   :  { %v852_v50 = vmul.f32 %v934_v48, %v49_v21  ;;  %v936_v52 = vpop.eup %935 }
 0x375   :  { %v854_v51 = vadd.f32 %v853_v26, %v852_v50 }
 0x377   :  { %937 = vtanh.f32 %v854_v51  ;;  %886 = vst [vmem:[%s1094_s6 + $0x10] sm:$0xff] %v854_v51 }
 0x384   :  { %v938_v53 = vpop.eup %937 }
 0x385   :  { %v856_v54 = vmul.f32 %v938_v53, %v936_v52 }
 0x387   :  { %885 = vst [vmem:[%s1093_s5 + $0x10] sm:$0xff] %v856_v54 }
 0x388   :  { %871 = vsyncpa [#allocation6], 1 }

</bundles_post_ra>
